<compile_context>
chip_gen: v7x
topology: tpu7x:2x2x1
jax: 0.10.0
libtpu: 0.0.40
codegen_flags: <defaults>
</compile_context>

<pallas_src>
import jax
import jax.numpy as jnp
from jax.experimental import pallas as pl
from jax.experimental.pallas import tpu as pltpu

IN_DIM = 4
HIDDEN = 64
OUT = 3
OUT_PAD = 8            # narrow lane-padded output slab (3 real + 5 padded classes)
NEG_BIG = -1e30        # bias for padded logits -> exp underflows to exactly 0


def _round_up(x, m):
    return ((x + m - 1) // m) * m


def mlp_softmax_kernel(x_ref, w1_ref, b1_ref, w2_ref, b2_ref, o_ref):
    x = x_ref[...]                                             # (TB, 4)

    # ---- Layer 1 on the MXU (K=4; MXU is otherwise idle) + ReLU. ----
    h = jnp.dot(x, w1_ref[...], preferred_element_type=jnp.float32)
    h = jnp.maximum(h + b1_ref[...], 0.0)                      # (TB, 64)

    # ---- Layer 2 on the MXU, 8 padded output lanes. ----
    logits = jnp.dot(h, w2_ref[...], preferred_element_type=jnp.float32)
    logits = logits + b2_ref[...]        # padded lanes carry -1e30 -> exp == 0

    # ---- Softmax over the (padded) last axis; exact divide. ----
    m = jnp.max(logits, axis=-1, keepdims=True)
    e = jnp.exp(logits - m)
    denom = jnp.sum(e, axis=-1, keepdims=True)
    o_ref[...] = (e / denom).astype(o_ref.dtype)


def mlp_forward(x, w1, b1, w2, b2, *, tile_b=8192):
    """x: (B, 4) f32. w1: (4, 64), b1: (1, 64), w2: (64, 3), b2: (1, 3)."""
    B = x.shape[0]

    # Pad layer-2 params once (in XLA) to the 8-wide output slab.
    w2p = jnp.zeros((HIDDEN, OUT_PAD), w2.dtype).at[:, :OUT].set(w2)
    b2p = jnp.full((1, OUT_PAD), NEG_BIG, b2.dtype).at[:, :OUT].set(b2)

    # Sublane-aligned batch tile.
    b_aligned = _round_up(max(B, 8), 8)
    tb = min(tile_b, b_aligned)
    # Give megacore (v7x, 2 TCs) at least 2 batch tiles when the batch permits.
    if b_aligned // tb < 2 and tb >= 16:
        tb = _round_up(tb // 2, 8)
    Bp = _round_up(B, tb)
    xp = x if Bp == B else jnp.pad(x, ((0, Bp - B), (0, 0)))

    out = pl.pallas_call(
        mlp_softmax_kernel,
        out_shape=jax.ShapeDtypeStruct((Bp, OUT_PAD), jnp.float32),
        grid_spec=pltpu.PrefetchScalarGridSpec(
            num_scalar_prefetch=0,
            grid=(Bp // tb,),
            in_specs=[
                pl.BlockSpec((tb, IN_DIM), lambda i: (i, 0)),        # x tile
                pl.BlockSpec((IN_DIM, HIDDEN), lambda i: (0, 0)),    # w1 resident
                pl.BlockSpec((1, HIDDEN), lambda i: (0, 0)),         # b1 resident
                pl.BlockSpec((HIDDEN, OUT_PAD), lambda i: (0, 0)),   # w2 resident
                pl.BlockSpec((1, OUT_PAD), lambda i: (0, 0)),        # b2 resident
            ],
            out_specs=pl.BlockSpec((tb, OUT_PAD), lambda i: (i, 0)),
        ),
        compiler_params=pltpu.CompilerParams(
            dimension_semantics=("parallel",),   # batch tiles independent
            vmem_limit_bytes=48 << 20,           # explicit: > v5e's 16 MiB default,
        ),                                       # < v7x's 64 MiB physical VMEM
    )(xp, w1, b1, w2p, b2p)

    # Tiny slice: drops padded batch rows and the 5 padded class lanes.
    return out[:B, :OUT]


def init_params(key):
    # Deterministic init mimicking nn.Linear defaults (uniform +/- 1/sqrt(fan_in)),
    # stored as (in, out) so the kernel computes x @ W directly.
    k1, k2, k3, k4 = jax.random.split(key, 4)
    bound1 = 1.0 / jnp.sqrt(4.0)
    bound2 = 1.0 / jnp.sqrt(64.0)
    w1 = jax.random.uniform(k1, (IN_DIM, HIDDEN), jnp.float32, -bound1, bound1)
    b1 = jax.random.uniform(k2, (1, HIDDEN), jnp.float32, -bound1, bound1)
    w2 = jax.random.uniform(k3, (HIDDEN, OUT), jnp.float32, -bound2, bound2)
    b2 = jax.random.uniform(k4, (1, OUT), jnp.float32, -bound2, bound2)
    return w1, b1, w2, b2


if __name__ == "__main__":
    key = jax.random.PRNGKey(0)
    kx, kp = jax.random.split(key)
    w1, b1, w2, b2 = init_params(kp)

    # Small shapes consistent with the module; second case exercises batch padding.
    for batch in (8, 5):
        x = jax.random.normal(kx, (batch, IN_DIM), dtype=jnp.float32)
        out = jax.block_until_ready(mlp_forward(x, w1, b1, w2, b2))

        # Pure-JAX reference.
        h = jnp.maximum(x @ w1 + b1, 0.0)
        logits = h @ w2 + b2
        ref = jax.nn.softmax(logits, axis=1)

        assert out.shape == (batch, OUT)
        assert jnp.allclose(out, ref, atol=1e-3, rtol=1e-3), "mismatch vs reference"
        assert jnp.allclose(jnp.sum(out, axis=1), 1.0, atol=1e-4), "rows not normalized"

    print("KERNEL_OK")
</pallas_src>

<mosaic_0001>
module attributes {stable_mosaic.version = 11 : i64} {
  func.func @mlp_softmax_kernel(%arg0: i32, %arg1: memref<8x4xf32, #tpu.memory_space<vmem>>, %arg2: memref<4x64xf32, #tpu.memory_space<vmem>>, %arg3: memref<1x64xf32, #tpu.memory_space<vmem>>, %arg4: memref<64x8xf32, #tpu.memory_space<vmem>>, %arg5: memref<1x8xf32, #tpu.memory_space<vmem>>, %arg6: memref<8x8xf32, #tpu.memory_space<vmem>>) attributes {dimension_semantics = [#tpu.dimension_semantics<parallel>], iteration_bounds = array<i64: 1>, scalar_prefetch = 0 : i64, scratch_operands = 0 : i64, tpu.core_type = #tpu.core_type<tc>, window_params = [{transform_indices = @transform_0, window_bounds = array<i64: 8, 4>}, {pipeline_mode = #tpu.pipeline_mode<synchronous>, transform_indices = @transform_1, window_bounds = array<i64: 4, 64>}, {pipeline_mode = #tpu.pipeline_mode<synchronous>, transform_indices = @transform_2, window_bounds = array<i64: 1, 64>}, {pipeline_mode = #tpu.pipeline_mode<synchronous>, transform_indices = @transform_3, window_bounds = array<i64: 64, 8>}, {pipeline_mode = #tpu.pipeline_mode<synchronous>, transform_indices = @transform_4, window_bounds = array<i64: 1, 8>}, {transform_indices = @transform_5, window_bounds = array<i64: 8, 8>}]} {
    %c0 = arith.constant 0 : index
    %c0_0 = arith.constant 0 : index
    %0 = vector.load %arg1[%c0, %c0_0] : memref<8x4xf32, #tpu.memory_space<vmem>>, vector<8x4xf32>
    %c0_1 = arith.constant 0 : index
    %c0_2 = arith.constant 0 : index
    %1 = vector.load %arg2[%c0_1, %c0_2] : memref<4x64xf32, #tpu.memory_space<vmem>>, vector<4x64xf32>
    %cst = arith.constant dense<0.000000e+00> : vector<8x64xf32>
    %2 = tpu.matmul %0, %1, %cst {dimension_numbers = #tpu.dot_dimension_numbers<[1], [0], [0], [1], [0, 0, 1, 1], [], []>} : vector<8x4xf32>, vector<4x64xf32>, vector<8x64xf32> -> vector<8x64xf32>
    %c0_3 = arith.constant 0 : index
    %c0_4 = arith.constant 0 : index
    %3 = vector.load %arg3[%c0_3, %c0_4] : memref<1x64xf32, #tpu.memory_space<vmem>>, vector<1x64xf32>
    %4 = vector.broadcast %3 : vector<1x64xf32> to vector<8x64xf32>
    %5 = arith.addf %2, %4 : vector<8x64xf32>
    %cst_5 = arith.constant 0.000000e+00 : f32
    %6 = vector.broadcast %cst_5 : f32 to vector<8x64xf32>
    %7 = arith.maximumf %5, %6 : vector<8x64xf32>
    %c0_6 = arith.constant 0 : index
    %c0_7 = arith.constant 0 : index
    %8 = vector.load %arg4[%c0_6, %c0_7] : memref<64x8xf32, #tpu.memory_space<vmem>>, vector<64x8xf32>
    %cst_8 = arith.constant dense<0.000000e+00> : vector<8x8xf32>
    %9 = tpu.matmul %7, %8, %cst_8 {dimension_numbers = #tpu.dot_dimension_numbers<[1], [0], [0], [1], [0, 0, 1, 1], [], []>} : vector<8x64xf32>, vector<64x8xf32>, vector<8x8xf32> -> vector<8x8xf32>
    %c0_9 = arith.constant 0 : index
    %c0_10 = arith.constant 0 : index
    %10 = vector.load %arg5[%c0_9, %c0_10] : memref<1x8xf32, #tpu.memory_space<vmem>>, vector<1x8xf32>
    %11 = vector.broadcast %10 : vector<1x8xf32> to vector<8x8xf32>
    %12 = arith.addf %9, %11 : vector<8x8xf32>
    %cst_11 = arith.constant dense<0xFF800000> : vector<8xf32>
    %13 = vector.multi_reduction <maximumf>, %12, %cst_11 [1] : vector<8x8xf32> to vector<8xf32>
    %14 = vector.shape_cast %13 : vector<8xf32> to vector<8x1xf32>
    %15 = vector.broadcast %14 : vector<8x1xf32> to vector<8x8xf32>
    %16 = arith.subf %12, %15 : vector<8x8xf32>
    %17 = math.exp %16 : vector<8x8xf32>
    %cst_12 = arith.constant dense<0.000000e+00> : vector<8xf32>
    %18 = vector.multi_reduction <add>, %17, %cst_12 [1] : vector<8x8xf32> to vector<8xf32>
    %19 = vector.shape_cast %18 : vector<8xf32> to vector<8x1xf32>
    %20 = vector.broadcast %19 : vector<8x1xf32> to vector<8x8xf32>
    %21 = arith.divf %17, %20 : vector<8x8xf32>
    %c0_13 = arith.constant 0 : index
    %c0_14 = arith.constant 0 : index
    %22 = vector.load %arg6[%c0_13, %c0_14] : memref<8x8xf32, #tpu.memory_space<vmem>>, vector<8x8xf32>
    tpu.vector_store %arg6[%c0_13, %c0_14], %21 {strides = array<i32>} : memref<8x8xf32, #tpu.memory_space<vmem>>, vector<8x8xf32>,
    return
  }
  func.func @transform_0(%arg0: i32) -> (i32, i32) {
    %c0_i32 = arith.constant 0 : i32
    %c0_i32_0 = arith.constant 0 : i32
    return %arg0, %c0_i32 : i32, i32
  }
  func.func @transform_1(%arg0: i32) -> (i32, i32) {
    %c0_i32 = arith.constant 0 : i32
    %c0_i32_0 = arith.constant 0 : i32
    %c0_i32_1 = arith.constant 0 : i32
    return %c0_i32, %c0_i32_0 : i32, i32
  }
  func.func @transform_2(%arg0: i32) -> (i32, i32) {
    %c0_i32 = arith.constant 0 : i32
    %c0_i32_0 = arith.constant 0 : i32
    %c0_i32_1 = arith.constant 0 : i32
    return %c0_i32, %c0_i32_0 : i32, i32
  }
  func.func @transform_3(%arg0: i32) -> (i32, i32) {
    %c0_i32 = arith.constant 0 : i32
    %c0_i32_0 = arith.constant 0 : i32
    %c0_i32_1 = arith.constant 0 : i32
    return %c0_i32, %c0_i32_0 : i32, i32
  }
  func.func @transform_4(%arg0: i32) -> (i32, i32) {
    %c0_i32 = arith.constant 0 : i32
    %c0_i32_0 = arith.constant 0 : i32
    %c0_i32_1 = arith.constant 0 : i32
    return %c0_i32, %c0_i32_0 : i32, i32
  }
  func.func @transform_5(%arg0: i32) -> (i32, i32) {
    %c0_i32 = arith.constant 0 : i32
    %c0_i32_0 = arith.constant 0 : i32
    return %arg0, %c0_i32 : i32, i32
  }
}

</mosaic_0001>

<bundles_post_ra>
// kernel: tpu_custom_call.1
= control target key start
LH: loop header
LB: loop body
LE: loop exit
PB: predicated region body
PF: predicated region fallthrough
CT: control target
= control target key end

     0   :  { %vm34_vm0 = vcmask 1043456   ;;  %v309_v2 = vmov 0.0   ;;  %vm310_vm1 = vmmov 0   ;;  %vm30_vm2 = vcmask 31744   ;;  %s394_s0 = inlined_call_operand.vmem [shape: f32[8,4], index: 0, kind: input, shape index: {}]   ;;  %s395_s1 = inlined_call_operand.vmem [shape: f32[4,64], index: 1, kind: input, shape index: {}]   ;;  %s396_s2 = inlined_call_operand.vmem [shape: f32[1,64], index: 2, kind: input, shape index: {}]   ;;  %s397_s3 = inlined_call_operand.vmem [shape: f32[64,8], index: 3, kind: input, shape index: {}]   ;;  %s398_s4 = inlined_call_operand.vmem [shape: f32[1,8], index: 4, kind: input, shape index: {}]   ;;  %s399_s5 = inlined_call_operand.hbm [shape: f32[8,8], index: 5, kind: output, shape index: {}]  }
   0x1   :  { %v22_v0 = vld [vmem:[%s395_s1] sm:$0xf]  ;;  %241 = vmatprep.subr.mxu0 %v309_v2  ;;  %243 = vmatprep.mubr.msk.f32.mxu0 %vm310_vm1, %v309_v2  ;;  %v110_v4 = vld [vmem:[%s397_s3 + $0x8] sm:$0xff]  ;;  %v111_v5 = vld [vmem:[%s397_s3 + $0x10] sm:$0xff]  ;;  %v311_v6 = vmov 0.0|0.0  }
   0x2   :  { %v21_v1 = vld [vmem:[%s394_s0] sm:$0xff]  ;;  %242 = vmatpush3.msk.msra.mxu0 %vm34_vm0, %v22_v0  ;;  %265 = vmatprep.subr.bf16.mxu1 %v311_v6  ;;  %v112_v8 = vld [vmem:[%s397_s3 + $0x18] sm:$0xff] }
   0x3   :  { %v109_v3 = vld [vmem:[%s397_s3] sm:$0xff]  ;;  %244 = vmatmul.mubr.msk.f32.vlgmr.msra.gmra.mrb[0].mxu0 %vm30_vm2, %v21_v1  ;;  %262 = vmatprep.mubr.msk.f32.mxu1 %vm310_vm1, %v309_v2 }
   0x4   :  { %v266_v7 = vpack.c.bf16 %v110_v4, %v109_v3 }
   0x5   :  { %10 = vsyncpa [#allocation3], 0  ;;  %v269_v9 = vpack.c.bf16 %v112_v8, %v111_v5  ;;  %v113_v10 = vld [vmem:[%s397_s3 + $0x20] sm:$0xff]  ;;  %v114_v11 = vld [vmem:[%s397_s3 + $0x28] sm:$0xff]  ;;  %vm124_vm3 = vcmask 523264   ;;  %vm198_vm4 = vcmask 64512  }
   0x6   :  { %267 = vmatpush3.bf16.msra.mxu1 %v266_v7  ;;  %v272_v12 = vpack.c.bf16 %v114_v11, %v113_v10  ;;  %v115_v13 = vld [vmem:[%s397_s3 + $0x30] sm:$0xff]  ;;  %v116_v14 = vld [vmem:[%s397_s3 + $0x38] sm:$0xff]  ;;  %v225_v16 = vld [vmem:[%s396_s2] ss:$0 sm:$0xff]  ;;  %s312_s2 = smov [#allocation2]  }
   0x7   :  { %268 = vmatprep.subr.bf16.mxu1 %v311_v6  ;;  %v275_v15 = vpack.c.bf16 %v116_v14, %v115_v13  ;;  %v228_v21 = vld [vmem:[%s398_s4] ss:$0 sm:$0xff]  ;;  %s217_s3 = sshll.u32 %s312_s2, 4  ;;  %s218_s3 = int_to_ptr.vmem [resolvable:$true] %s217_s3 }
   0x8   :  { %s285_s4 = scalar_lea.vmem %s218_s3, 128  ;;  %p290_p1 = scmp.lt.s32.totalorder %s218_s3, %s218_s3 }
   0x9   :  { %p286_p0 = scmp.ne.s32.totalorder %s218_s3, %s285_s4  ;;  %p291_p2 = scmp.lt.s32.totalorder %s285_s4, %s285_s4 }
   0xa   :  { %270 = vmatpush3.bf16.msra.mxu1 %v269_v9 }
   0xb   :  { %271 = vmatprep.subr.bf16.mxu1 %v311_v6  ;;  %p292_p3 = por %p291_p2, %p290_p1 }
   0xd   :  { %p293_p4 = pnand %p292_p3, %p286_p0 }
   0xe   :  { %273 = vmatpush3.bf16.msra.mxu1 %v272_v12 }
   0xf   :  { %274 = vmatprep.subr.bf16.mxu1 %v311_v6 }
  0x12   :  { %276 = vmatpush3.bf16.msra.mxu1 %v275_v15 }
  0xd6   :  { %v104_v17 = vpop.f32.mrb[0].mxu0 }
  0xd7   :  { %v105_v18 = vadd.f32 %v225_v16, %v104_v17  ;;  %v245_v19 = vpop.f32.mrb[1].mxu0 }
  0xd9   :  { %v108_v20 = vmax.f32 %v105_v18, 0.0 }
  0xdb   :  { %263 = vmatmul.mubr.msk.f32.vlgmr.msra.gmra.mrb[0].mxu1 %vm124_vm3, %v108_v20 }
 0x1ae   :  { %v194_v22 = vpop.f32.mrb[0].mxu1 }
 0x1af   :  { %v195_v23 = vadd.f32 %v228_v21, %v194_v22  ;;  %v264_v24 = vpop.f32.mrb[1].mxu1 }
 0x1b1   :  { %v199_v25 = vsel %vm198_vm4, %v195_v23, -inf }
 0x1b2   :  { %200 = vmax.xlane.f32.xlu0 %v199_v25 }
 0x23f   :  { %v201_v26 = vpop.xlane.xlu0 %200 }
 0x240   :  { %v202_v27 = vsub.f32 %v195_v23, %v201_v26 }
 0x242   :  { %v203_v28 = vmul.f32 1.442695, %v202_v27 }
 0x244   :  { %281 = vpow2.f32 %v203_v28 }
 0x24e   :  { %v282_v29 = vpop.eup %281 }
 0x24f   :  { %v205_v30 = vsel %vm198_vm4, %v282_v29, 0.0 }
 0x250   :  { %206 = vadd.xlane.f32.xlu0 %v205_v30 }
 0x2dd   :  { %v207_v31 = vpop.xlane.xlu0 %206 }
 0x2de   :  { %283 = vrcp.f32 %v207_v31 }
 0x2e8   :  { %v284_v32 = vpop.eup %283 }
 0x2e9   :  { %v209_v33 = vmul.f32 %v284_v32, %v282_v29 }
 0x2eb   :  { %210 = vst.msk [vmem:[#allocation2] sm:$0xff] %vm198_vm4, %v209_v33 }
 0x2ec   :  { %296 = shalt.err (!%p293_p4)
}
 0x2ed   :  { %s297_s17 = scalar_lea.hbm %s399_s5, 128 }
 0x2ee   :  { %p298_p5 = scmp.ne.s32.totalorder %s399_s5, %s297_s17  ;;  %p301_p6 = scmp.lt.u32.totalorder %s297_s17, %s399_s5 }
 0x2f0   :  { %p303_p7 = pnand %p301_p6, %p298_p5 }
 0x2f2   :  { %306 = shalt.err (!%p303_p7)
}
 0x2f3   :  { %220 = dma.vmem_to_hbm [thread:$0]  %s218_s3, 128, %s399_s5, [#allocation3]  }
 0x2f4   :  { %307 = dma.done.wait [#allocation3], 128  }
 0x2f5   :  { %308 = vsyncadd [#allocation3], 4294967168 }
 0x2f6   :  { %224 = vsyncpa [#allocation3], 1 }

</bundles_post_ra>
